<compile_context>
chip_gen: v7x
topology: tpu7x:2x2x1
jax: 0.10.0
libtpu: 0.0.40
codegen_flags: <defaults>
</compile_context>

<pallas_src>
import functools

import jax
import jax.numpy as jnp
from jax.experimental import pallas as pl
from jax.experimental.pallas import tpu as pltpu

LN_EPS = 1e-5


def _round_up(x, m):
    return (x + m - 1) // m * m


def _layer_norm(x, gamma, beta):
    # Single-pass LN: the two reductions (sum, sum of squares) are independent.
    n = x.shape[-1]
    s1 = jnp.sum(x, axis=-1, keepdims=True)
    s2 = jnp.sum(x * x, axis=-1, keepdims=True)
    mu = s1 * (1.0 / n)
    var = jnp.maximum(s2 * (1.0 / n) - mu * mu, 0.0)
    return (x - mu) * jax.lax.rsqrt(var + LN_EPS) * gamma + beta


def ppo_actor_kernel(obs_ref, h0_ref, mask_ref, wpk_ref, vpk_ref, out_ref,
                     *, wlayout, vlayout, rnn):
    f32 = jnp.float32

    def w(name):
        r0, rp, r, c = wlayout[name]
        # Tile-aligned block load (r0/rp are 8-multiples, full 128 lanes),
        # then a static value slice down to the true (r, c) extent.
        return wpk_ref[r0:r0 + rp, :][:r, :c]

    # The whole packed 1-D-param block is only a couple of vregs; load once.
    vec = vpk_ref[...]

    def v(name):
        k, c = vlayout[name]
        return vec[k:k + 1, :c]

    obs = obs_ref[...]

    # ---------------- MLPBase: 2 x [Linear -> ReLU -> LayerNorm] ----------------
    x = jnp.maximum(jnp.dot(obs, w("w1"), preferred_element_type=f32) + v("b1"), 0.0)
    x = _layer_norm(x, v("g1"), v("be1"))
    x = jnp.maximum(jnp.dot(x, w("w2"), preferred_element_type=f32) + v("b2"), 0.0)
    x = _layer_norm(x, v("g2"), v("be2"))

    # ---------------- GRULayer (single layer, single step) ----------------
    h = h0_ref[...] * mask_ref[...]          # mask resets hidden state
    # Fused gate matmuls: Wi = [Wir|Wiz|Win], Wh = [Whr|Whz|Whn].
    # bi row already holds (bir+bhr, biz+bhz, bin); bh row holds (0, 0, bhn).
    gi = jnp.dot(x, w("wi"), preferred_element_type=f32) + v("bi")
    gh = jnp.dot(h, w("wh"), preferred_element_type=f32) + v("bh")
    r = jax.nn.sigmoid(gi[:, 0:rnn] + gh[:, 0:rnn])
    z = jax.nn.sigmoid(gi[:, rnn:2 * rnn] + gh[:, rnn:2 * rnn])
    n = jnp.tanh(gi[:, 2 * rnn:3 * rnn] + r * gh[:, 2 * rnn:3 * rnn])
    h_new = (1.0 - z) * n + z * h
    feat = _layer_norm(h_new, v("gng"), v("gnb"))

    # ---------------- ACTLayer ----------------
    a = jnp.maximum(jnp.dot(feat, w("wa"), preferred_element_type=f32) + v("ba"), 0.0)
    a = _layer_norm(a, v("ga"), v("bea"))
    logits = jnp.dot(a, w("wo"), preferred_element_type=f32) + v("bo")

    # deterministic action = argmax; log_prob = log_softmax(logits)[argmax] = -logsumexp(logits - max)
    mx = jnp.max(logits, axis=-1, keepdims=True)
    logp = -jnp.log(jnp.sum(jnp.exp(logits - mx), axis=-1, keepdims=True))

    n_act = logits.shape[-1]
    iota = jax.lax.broadcasted_iota(jnp.int32, logits.shape, 1)
    cand = jnp.where(logits == mx, iota, jnp.int32(n_act))
    action = jnp.min(cand, axis=-1, keepdims=True)  # first-max tie-break, like torch.argmax

    # Pack everything into one lane-dense output slab:
    #   lanes [0:rnn]       -> new (un-normalized) hidden state, lane-aligned store
    #   lane  [rnn]         -> action (as f32)
    #   lane  [rnn+1]       -> log_prob
    out_ref[...] = jnp.zeros_like(out_ref)
    out_ref[:, 0:rnn] = h_new
    out_ref[:, rnn:rnn + 1] = action.astype(f32)
    out_ref[:, rnn + 1:rnn + 2] = logp


def pack_params(params, obs_dim, hidden, rnn, act_hidden, n_act):
    """Pack all actor parameters into two contiguous lane-padded buffers."""
    f32 = jnp.float32
    pw = _round_up(max(hidden, 3 * rnn, act_hidden, n_act), 128)

    # ---- weight matrices (row offsets kept 8-aligned) ----
    wi = jnp.concatenate([params["wir"], params["wiz"], params["win"]], axis=1)
    wh = jnp.concatenate([params["whr"], params["whz"], params["whn"]], axis=1)
    weights = [
        ("w1", params["w1"]), ("w2", params["w2"]),
        ("wi", wi), ("wh", wh),
        ("wa", params["wa"]), ("wo", params["wo"]),
    ]
    wlayout, blocks, row = {}, [], 0
    for name, arr in weights:
        r, c = arr.shape
        rp = _round_up(r, 8)
        blk = jnp.zeros((rp, pw), f32).at[:r, :c].set(arr.astype(f32))
        wlayout[name] = (row, rp, r, c)
        blocks.append(blk)
        row += rp
    wpk = jnp.concatenate(blocks, axis=0)

    # ---- 1-D params, one row each ----
    # Fold the r/z hidden-side GRU biases into the input-side bias row;
    # keep bin / bhn separate: n = tanh(x@Win + bin + r*(h@Whn + bhn)).
    bi = jnp.concatenate([
        (params["bir"] + params["bhr"]).reshape(1, -1),
        (params["biz"] + params["bhz"]).reshape(1, -1),
        params["bin"].reshape(1, -1)], axis=1)
    bh = jnp.concatenate([
        jnp.zeros((1, rnn), f32), jnp.zeros((1, rnn), f32),
        params["bhn"].reshape(1, -1)], axis=1)

    vecs = [
        ("b1", params["b1"]), ("g1", params["g1"]), ("be1", params["be1"]),
        ("b2", params["b2"]), ("g2", params["g2"]), ("be2", params["be2"]),
        ("bi", bi), ("bh", bh),
        ("gng", params["gng"]), ("gnb", params["gnb"]),
        ("ba", params["ba"]), ("ga", params["ga"]), ("bea", params["bea"]),
        ("bo", params["bo"]),
    ]
    vlayout = {}
    nv = _round_up(len(vecs), 8)
    vpk = jnp.zeros((nv, pw), f32)
    for k, (name, arr) in enumerate(vecs):
        flat = arr.reshape(-1).astype(f32)
        vlayout[name] = (k, flat.shape[0])
        vpk = vpk.at[k, :flat.shape[0]].set(flat)
    return wpk, vpk, wlayout, vlayout


def ppo_actor_forward(obs, rnn_states, masks, wpk, vpk, wlayout, vlayout, *, block_b=None):
    """obs: (B, D_obs) f32; rnn_states: (B, 1, H_rnn) f32; masks: (B, 1) f32."""
    B, obs_dim = obs.shape
    n_layers = rnn_states.shape[1]
    assert n_layers == 1, "kernel implements a single-layer GRU"
    rnn = rnn_states.shape[-1]
    h0 = rnn_states.reshape(B, rnn)

    if block_b is None:
        block_b = B
        for cand in (1024, 512, 256, 128):
            if B > cand and B % cand == 0:
                block_b = cand
                break
    assert B % block_b == 0 and (block_b == B or block_b % 8 == 0)

    outw = _round_up(2 + rnn, 128)
    grid = (B // block_b,)

    kernel = functools.partial(ppo_actor_kernel,
                               wlayout=wlayout, vlayout=vlayout, rnn=rnn)

    slab = pl.pallas_call(
        kernel,
        grid=grid,
        in_specs=[
            pl.BlockSpec((block_b, obs_dim), lambda i: (i, 0)),
            pl.BlockSpec((block_b, rnn), lambda i: (i, 0)),
            pl.BlockSpec((block_b, 1), lambda i: (i, 0)),
            pl.BlockSpec(wpk.shape, lambda i: (0, 0)),   # params stay resident in VMEM
            pl.BlockSpec(vpk.shape, lambda i: (0, 0)),
        ],
        out_specs=pl.BlockSpec((block_b, outw), lambda i: (i, 0)),
        out_shape=jax.ShapeDtypeStruct((B, outw), jnp.float32),
        compiler_params=pltpu.CompilerParams(dimension_semantics=("parallel",)),
    )(obs, h0, masks, wpk, vpk)

    new_rnn = slab[:, 0:rnn].reshape(B, n_layers, rnn)
    actions = slab[:, rnn:rnn + 1].astype(jnp.int32)
    log_probs = slab[:, rnn + 1:rnn + 2]
    return actions, log_probs, new_rnn


def init_params(key, obs_dim, hidden, rnn_hidden, act_hidden, n_act, gain=0.01):
    ks = list(jax.random.split(key, 32))
    kit = iter(ks)

    def lin(k, fan_in, fan_out, scale=None):
        s = scale if scale is not None else (1.0 / jnp.sqrt(fan_in))
        return jax.random.normal(k, (fan_in, fan_out), jnp.float32) * s

    p = {}
    # MLPBase
    p["w1"] = lin(next(kit), obs_dim, hidden)
    p["b1"] = jnp.zeros((1, hidden), jnp.float32)
    p["g1"] = jnp.ones((1, hidden), jnp.float32)
    p["be1"] = jnp.zeros((1, hidden), jnp.float32)
    p["w2"] = lin(next(kit), hidden, hidden)
    p["b2"] = jnp.zeros((1, hidden), jnp.float32)
    p["g2"] = jnp.ones((1, hidden), jnp.float32)
    p["be2"] = jnp.zeros((1, hidden), jnp.float32)
    # GRU (gate order r, z, n)
    for name, fi in [("wir", hidden), ("wiz", hidden), ("win", hidden),
                     ("whr", rnn_hidden), ("whz", rnn_hidden), ("whn", rnn_hidden)]:
        p[name] = lin(next(kit), fi, rnn_hidden)
    for name in ["bir", "biz", "bin", "bhr", "bhz", "bhn"]:
        p[name] = jax.random.normal(next(kit), (1, rnn_hidden), jnp.float32) * 0.05
    p["gng"] = jnp.ones((1, rnn_hidden), jnp.float32)
    p["gnb"] = jnp.zeros((1, rnn_hidden), jnp.float32)
    # ACTLayer
    p["wa"] = lin(next(kit), rnn_hidden, act_hidden)
    p["ba"] = jnp.zeros((1, act_hidden), jnp.float32)
    p["ga"] = jnp.ones((1, act_hidden), jnp.float32)
    p["bea"] = jnp.zeros((1, act_hidden), jnp.float32)
    p["wo"] = lin(next(kit), act_hidden, n_act, scale=gain / jnp.sqrt(act_hidden))
    p["bo"] = jnp.zeros((1, n_act), jnp.float32)
    return p


def _ref_forward(obs, rnn_states, masks, p):
    """Pure-JAX reference with the original per-gate params (two-pass LN)."""
    def ln(x, g, b):
        mu = jnp.mean(x, -1, keepdims=True)
        var = jnp.mean((x - mu) ** 2, -1, keepdims=True)
        return (x - mu) / jnp.sqrt(var + LN_EPS) * g + b

    x = jnp.maximum(obs @ p["w1"] + p["b1"], 0.0)
    x = ln(x, p["g1"], p["be1"])
    x = jnp.maximum(x @ p["w2"] + p["b2"], 0.0)
    x = ln(x, p["g2"], p["be2"])
    h = rnn_states[:, 0, :] * masks
    r = jax.nn.sigmoid(x @ p["wir"] + p["bir"] + h @ p["whr"] + p["bhr"])
    z = jax.nn.sigmoid(x @ p["wiz"] + p["biz"] + h @ p["whz"] + p["bhz"])
    n = jnp.tanh(x @ p["win"] + p["bin"] + r * (h @ p["whn"] + p["bhn"]))
    h_new = (1.0 - z) * n + z * h
    feat = ln(h_new, p["gng"], p["gnb"])
    a = jnp.maximum(feat @ p["wa"] + p["ba"], 0.0)
    a = ln(a, p["ga"], p["bea"])
    logits = a @ p["wo"] + p["bo"]
    logp_all = jax.nn.log_softmax(logits, axis=-1)
    act = jnp.argmax(logits, axis=-1)[:, None]
    logp = jnp.take_along_axis(logp_all, act, axis=-1)
    return act.astype(jnp.int32), logp, h_new[:, None, :]


if __name__ == "__main__":
    B = 8            # batch of parallel env threads
    OBS_DIM = 16     # flat observation features
    HIDDEN = 32      # args.hidden_size
    RNN_HIDDEN = 32  # args.recurrent_hidden_size
    ACT_HIDDEN = 32  # args.act_hidden_size
    N_ACT = 6        # Discrete action space
    N_LAYERS = 1     # args.recurrent_hidden_layers

    key = jax.random.PRNGKey(0)
    k_obs, k_h, k_m, k_p = jax.random.split(key, 4)

    obs = jax.random.normal(k_obs, (B, OBS_DIM), jnp.float32)
    rnn_states = jax.random.normal(k_h, (B, N_LAYERS, RNN_HIDDEN), jnp.float32)
    masks = (jax.random.uniform(k_m, (B, 1)) > 0.3).astype(jnp.float32)

    params = init_params(k_p, OBS_DIM, HIDDEN, RNN_HIDDEN, ACT_HIDDEN, N_ACT)
    wpk, vpk, wlayout, vlayout = pack_params(
        params, OBS_DIM, HIDDEN, RNN_HIDDEN, ACT_HIDDEN, N_ACT)

    actions, action_log_probs, new_rnn_states = ppo_actor_forward(
        obs, rnn_states, masks, wpk, vpk, wlayout, vlayout)
    jax.block_until_ready((actions, action_log_probs, new_rnn_states))

    assert actions.shape == (B, 1) and actions.dtype == jnp.int32
    assert action_log_probs.shape == (B, 1)
    assert new_rnn_states.shape == (B, N_LAYERS, RNN_HIDDEN)

    # Correctness check against a pure-JAX reference (unpacked params, two-pass LN).
    ref_act, ref_logp, ref_h = _ref_forward(obs, rnn_states, masks, params)
    assert jnp.array_equal(actions, ref_act)
    assert jnp.allclose(action_log_probs, ref_logp, atol=1e-4, rtol=1e-4)
    assert jnp.allclose(new_rnn_states, ref_h, atol=1e-4, rtol=1e-4)

    print("KERNEL_OK")
</pallas_src>

<mosaic_0001>
module attributes {stable_mosaic.version = 11 : i64} {
  func.func @ppo_actor_kernel(%arg0: i32, %arg1: memref<8x16xf32, #tpu.memory_space<vmem>>, %arg2: memref<8x32xf32, #tpu.memory_space<vmem>>, %arg3: memref<8x1xf32, #tpu.memory_space<vmem>>, %arg4: memref<176x128xf32, #tpu.memory_space<vmem>>, %arg5: memref<16x128xf32, #tpu.memory_space<vmem>>, %arg6: memref<8x128xf32, #tpu.memory_space<vmem>>) attributes {dimension_semantics = [#tpu.dimension_semantics<parallel>], iteration_bounds = array<i64: 1>, scalar_prefetch = 0 : i64, scratch_operands = 0 : i64, tpu.core_type = #tpu.core_type<tc>, window_params = [{transform_indices = @transform_0, window_bounds = array<i64: 8, 16>}, {transform_indices = @transform_1, window_bounds = array<i64: 8, 32>}, {transform_indices = @transform_2, window_bounds = array<i64: 8, 1>}, {pipeline_mode = #tpu.pipeline_mode<synchronous>, transform_indices = @transform_3, window_bounds = array<i64: 176, 128>}, {pipeline_mode = #tpu.pipeline_mode<synchronous>, transform_indices = @transform_4, window_bounds = array<i64: 16, 128>}, {transform_indices = @transform_5, window_bounds = array<i64: 8, 128>}]} {
    %c0 = arith.constant 0 : index
    %c0_0 = arith.constant 0 : index
    %0 = vector.load %arg5[%c0, %c0_0] : memref<16x128xf32, #tpu.memory_space<vmem>>, vector<16x128xf32>
    %c0_1 = arith.constant 0 : index
    %c0_2 = arith.constant 0 : index
    %1 = vector.load %arg1[%c0_1, %c0_2] : memref<8x16xf32, #tpu.memory_space<vmem>>, vector<8x16xf32>
    %c0_3 = arith.constant 0 : index
    %c0_4 = arith.constant 0 : index
    %2 = vector.load %arg4[%c0_3, %c0_4] : memref<176x128xf32, #tpu.memory_space<vmem>>, vector<16x128xf32>
    %3 = vector.extract_strided_slice %2 {offsets = [0, 0], sizes = [16, 32], strides = [1, 1]} : vector<16x128xf32> to vector<16x32xf32>
    %cst = arith.constant dense<0.000000e+00> : vector<8x32xf32>
    %4 = tpu.matmul %1, %3, %cst {dimension_numbers = #tpu.dot_dimension_numbers<[1], [0], [0], [1], [0, 0, 1, 1], [], []>} : vector<8x16xf32>, vector<16x32xf32>, vector<8x32xf32> -> vector<8x32xf32>
    %5 = vector.extract_strided_slice %0 {offsets = [0, 0], sizes = [1, 32], strides = [1, 1]} : vector<16x128xf32> to vector<1x32xf32>
    %6 = vector.broadcast %5 : vector<1x32xf32> to vector<8x32xf32>
    %7 = arith.addf %4, %6 : vector<8x32xf32>
    %cst_5 = arith.constant 0.000000e+00 : f32
    %8 = vector.broadcast %cst_5 : f32 to vector<8x32xf32>
    %9 = arith.maximumf %7, %8 : vector<8x32xf32>
    %10 = vector.extract_strided_slice %0 {offsets = [1, 0], sizes = [1, 32], strides = [1, 1]} : vector<16x128xf32> to vector<1x32xf32>
    %11 = vector.extract_strided_slice %0 {offsets = [2, 0], sizes = [1, 32], strides = [1, 1]} : vector<16x128xf32> to vector<1x32xf32>
    %cst_6 = arith.constant dense<0.000000e+00> : vector<8xf32>
    %12 = vector.multi_reduction <add>, %9, %cst_6 [1] : vector<8x32xf32> to vector<8xf32>
    %13 = vector.shape_cast %12 : vector<8xf32> to vector<8x1xf32>
    %14 = arith.mulf %9, %9 : vector<8x32xf32>
    %cst_7 = arith.constant dense<0.000000e+00> : vector<8xf32>
    %15 = vector.multi_reduction <add>, %14, %cst_7 [1] : vector<8x32xf32> to vector<8xf32>
    %16 = vector.shape_cast %15 : vector<8xf32> to vector<8x1xf32>
    %cst_8 = arith.constant 3.125000e-02 : f32
    %17 = vector.broadcast %cst_8 : f32 to vector<8x1xf32>
    %18 = arith.mulf %13, %17 : vector<8x1xf32>
    %cst_9 = arith.constant 3.125000e-02 : f32
    %19 = vector.broadcast %cst_9 : f32 to vector<8x1xf32>
    %20 = arith.mulf %16, %19 : vector<8x1xf32>
    %21 = arith.mulf %18, %18 : vector<8x1xf32>
    %22 = arith.subf %20, %21 : vector<8x1xf32>
    %cst_10 = arith.constant 0.000000e+00 : f32
    %23 = vector.broadcast %cst_10 : f32 to vector<8x1xf32>
    %24 = arith.maximumf %22, %23 : vector<8x1xf32>
    %25 = vector.broadcast %18 : vector<8x1xf32> to vector<8x32xf32>
    %26 = arith.subf %9, %25 : vector<8x32xf32>
    %cst_11 = arith.constant 9.99999974E-6 : f32
    %27 = vector.broadcast %cst_11 : f32 to vector<8x1xf32>
    %28 = arith.addf %24, %27 : vector<8x1xf32>
    %29 = math.rsqrt %28 : vector<8x1xf32>
    %30 = vector.broadcast %29 : vector<8x1xf32> to vector<8x32xf32>
    %31 = arith.mulf %26, %30 : vector<8x32xf32>
    %32 = vector.broadcast %10 : vector<1x32xf32> to vector<8x32xf32>
    %33 = arith.mulf %31, %32 : vector<8x32xf32>
    %34 = vector.broadcast %11 : vector<1x32xf32> to vector<8x32xf32>
    %35 = arith.addf %33, %34 : vector<8x32xf32>
    %c16 = arith.constant 16 : index
    %c0_12 = arith.constant 0 : index
    %36 = vector.load %arg4[%c16, %c0_12] : memref<176x128xf32, #tpu.memory_space<vmem>>, vector<32x128xf32>
    %37 = vector.extract_strided_slice %36 {offsets = [0, 0], sizes = [32, 32], strides = [1, 1]} : vector<32x128xf32> to vector<32x32xf32>
    %cst_13 = arith.constant dense<0.000000e+00> : vector<8x32xf32>
    %38 = tpu.matmul %35, %37, %cst_13 {dimension_numbers = #tpu.dot_dimension_numbers<[1], [0], [0], [1], [0, 0, 1, 1], [], []>} : vector<8x32xf32>, vector<32x32xf32>, vector<8x32xf32> -> vector<8x32xf32>
    %39 = vector.extract_strided_slice %0 {offsets = [3, 0], sizes = [1, 32], strides = [1, 1]} : vector<16x128xf32> to vector<1x32xf32>
    %40 = vector.broadcast %39 : vector<1x32xf32> to vector<8x32xf32>
    %41 = arith.addf %38, %40 : vector<8x32xf32>
    %cst_14 = arith.constant 0.000000e+00 : f32
    %42 = vector.broadcast %cst_14 : f32 to vector<8x32xf32>
    %43 = arith.maximumf %41, %42 : vector<8x32xf32>
    %44 = vector.extract_strided_slice %0 {offsets = [4, 0], sizes = [1, 32], strides = [1, 1]} : vector<16x128xf32> to vector<1x32xf32>
    %45 = vector.extract_strided_slice %0 {offsets = [5, 0], sizes = [1, 32], strides = [1, 1]} : vector<16x128xf32> to vector<1x32xf32>
    %cst_15 = arith.constant dense<0.000000e+00> : vector<8xf32>
    %46 = vector.multi_reduction <add>, %43, %cst_15 [1] : vector<8x32xf32> to vector<8xf32>
    %47 = vector.shape_cast %46 : vector<8xf32> to vector<8x1xf32>
    %48 = arith.mulf %43, %43 : vector<8x32xf32>
    %cst_16 = arith.constant dense<0.000000e+00> : vector<8xf32>
    %49 = vector.multi_reduction <add>, %48, %cst_16 [1] : vector<8x32xf32> to vector<8xf32>
    %50 = vector.shape_cast %49 : vector<8xf32> to vector<8x1xf32>
    %cst_17 = arith.constant 3.125000e-02 : f32
    %51 = vector.broadcast %cst_17 : f32 to vector<8x1xf32>
    %52 = arith.mulf %47, %51 : vector<8x1xf32>
    %cst_18 = arith.constant 3.125000e-02 : f32
    %53 = vector.broadcast %cst_18 : f32 to vector<8x1xf32>
    %54 = arith.mulf %50, %53 : vector<8x1xf32>
    %55 = arith.mulf %52, %52 : vector<8x1xf32>
    %56 = arith.subf %54, %55 : vector<8x1xf32>
    %cst_19 = arith.constant 0.000000e+00 : f32
    %57 = vector.broadcast %cst_19 : f32 to vector<8x1xf32>
    %58 = arith.maximumf %56, %57 : vector<8x1xf32>
    %59 = vector.broadcast %52 : vector<8x1xf32> to vector<8x32xf32>
    %60 = arith.subf %43, %59 : vector<8x32xf32>
    %cst_20 = arith.constant 9.99999974E-6 : f32
    %61 = vector.broadcast %cst_20 : f32 to vector<8x1xf32>
    %62 = arith.addf %58, %61 : vector<8x1xf32>
    %63 = math.rsqrt %62 : vector<8x1xf32>
    %64 = vector.broadcast %63 : vector<8x1xf32> to vector<8x32xf32>
    %65 = arith.mulf %60, %64 : vector<8x32xf32>
    %66 = vector.broadcast %44 : vector<1x32xf32> to vector<8x32xf32>
    %67 = arith.mulf %65, %66 : vector<8x32xf32>
    %68 = vector.broadcast %45 : vector<1x32xf32> to vector<8x32xf32>
    %69 = arith.addf %67, %68 : vector<8x32xf32>
    %c0_21 = arith.constant 0 : index
    %c0_22 = arith.constant 0 : index
    %70 = vector.load %arg2[%c0_21, %c0_22] : memref<8x32xf32, #tpu.memory_space<vmem>>, vector<8x32xf32>
    %c0_23 = arith.constant 0 : index
    %c0_24 = arith.constant 0 : index
    %71 = vector.load %arg3[%c0_23, %c0_24] : memref<8x1xf32, #tpu.memory_space<vmem>>, vector<8x1xf32>
    %72 = vector.broadcast %71 : vector<8x1xf32> to vector<8x32xf32>
    %73 = arith.mulf %70, %72 : vector<8x32xf32>
    %c48 = arith.constant 48 : index
    %c0_25 = arith.constant 0 : index
    %74 = vector.load %arg4[%c48, %c0_25] : memref<176x128xf32, #tpu.memory_space<vmem>>, vector<32x128xf32>
    %75 = vector.extract_strided_slice %74 {offsets = [0, 0], sizes = [32, 96], strides = [1, 1]} : vector<32x128xf32> to vector<32x96xf32>
    %cst_26 = arith.constant dense<0.000000e+00> : vector<8x96xf32>
    %76 = tpu.matmul %69, %75, %cst_26 {dimension_numbers = #tpu.dot_dimension_numbers<[1], [0], [0], [1], [0, 0, 1, 1], [], []>} : vector<8x32xf32>, vector<32x96xf32>, vector<8x96xf32> -> vector<8x96xf32>
    %77 = vector.extract_strided_slice %0 {offsets = [6, 0], sizes = [1, 96], strides = [1, 1]} : vector<16x128xf32> to vector<1x96xf32>
    %78 = vector.broadcast %77 : vector<1x96xf32> to vector<8x96xf32>
    %79 = arith.addf %76, %78 : vector<8x96xf32>
    %c80 = arith.constant 80 : index
    %c0_27 = arith.constant 0 : index
    %80 = vector.load %arg4[%c80, %c0_27] : memref<176x128xf32, #tpu.memory_space<vmem>>, vector<32x128xf32>
    %81 = vector.extract_strided_slice %80 {offsets = [0, 0], sizes = [32, 96], strides = [1, 1]} : vector<32x128xf32> to vector<32x96xf32>
    %cst_28 = arith.constant dense<0.000000e+00> : vector<8x96xf32>
    %82 = tpu.matmul %73, %81, %cst_28 {dimension_numbers = #tpu.dot_dimension_numbers<[1], [0], [0], [1], [0, 0, 1, 1], [], []>} : vector<8x32xf32>, vector<32x96xf32>, vector<8x96xf32> -> vector<8x96xf32>
    %83 = vector.extract_strided_slice %0 {offsets = [7, 0], sizes = [1, 96], strides = [1, 1]} : vector<16x128xf32> to vector<1x96xf32>
    %84 = vector.broadcast %83 : vector<1x96xf32> to vector<8x96xf32>
    %85 = arith.addf %82, %84 : vector<8x96xf32>
    %86 = vector.extract_strided_slice %79 {offsets = [0, 0], sizes = [8, 32], strides = [1, 1]} : vector<8x96xf32> to vector<8x32xf32>
    %87 = vector.extract_strided_slice %85 {offsets = [0, 0], sizes = [8, 32], strides = [1, 1]} : vector<8x96xf32> to vector<8x32xf32>
    %88 = arith.addf %86, %87 : vector<8x32xf32>
    %89 = arith.negf %88 : vector<8x32xf32>
    %90 = math.exp %89 : vector<8x32xf32>
    %cst_29 = arith.constant 1.000000e+00 : f32
    %91 = vector.broadcast %cst_29 : f32 to vector<8x32xf32>
    %92 = arith.addf %91, %90 : vector<8x32xf32>
    %93 = arith.divf %91, %92 : vector<8x32xf32>
    %94 = vector.extract_strided_slice %79 {offsets = [0, 32], sizes = [8, 32], strides = [1, 1]} : vector<8x96xf32> to vector<8x32xf32>
    %95 = vector.extract_strided_slice %85 {offsets = [0, 32], sizes = [8, 32], strides = [1, 1]} : vector<8x96xf32> to vector<8x32xf32>
    %96 = arith.addf %94, %95 : vector<8x32xf32>
    %97 = arith.negf %96 : vector<8x32xf32>
    %98 = math.exp %97 : vector<8x32xf32>
    %cst_30 = arith.constant 1.000000e+00 : f32
    %99 = vector.broadcast %cst_30 : f32 to vector<8x32xf32>
    %100 = arith.addf %99, %98 : vector<8x32xf32>
    %101 = arith.divf %99, %100 : vector<8x32xf32>
    %102 = vector.extract_strided_slice %79 {offsets = [0, 64], sizes = [8, 32], strides = [1, 1]} : vector<8x96xf32> to vector<8x32xf32>
    %103 = vector.extract_strided_slice %85 {offsets = [0, 64], sizes = [8, 32], strides = [1, 1]} : vector<8x96xf32> to vector<8x32xf32>
    %104 = arith.mulf %93, %103 : vector<8x32xf32>
    %105 = arith.addf %102, %104 : vector<8x32xf32>
    %106 = math.tanh %105 : vector<8x32xf32>
    %cst_31 = arith.constant 1.000000e+00 : f32
    %107 = vector.broadcast %cst_31 : f32 to vector<8x32xf32>
    %108 = arith.subf %107, %101 : vector<8x32xf32>
    %109 = arith.mulf %108, %106 : vector<8x32xf32>
    %110 = arith.mulf %101, %73 : vector<8x32xf32>
    %111 = arith.addf %109, %110 : vector<8x32xf32>
    %112 = vector.extract_strided_slice %0 {offsets = [8, 0], sizes = [1, 32], strides = [1, 1]} : vector<16x128xf32> to vector<1x32xf32>
    %113 = vector.extract_strided_slice %0 {offsets = [9, 0], sizes = [1, 32], strides = [1, 1]} : vector<16x128xf32> to vector<1x32xf32>
    %cst_32 = arith.constant dense<0.000000e+00> : vector<8xf32>
    %114 = vector.multi_reduction <add>, %111, %cst_32 [1] : vector<8x32xf32> to vector<8xf32>
    %115 = vector.shape_cast %114 : vector<8xf32> to vector<8x1xf32>
    %116 = arith.mulf %111, %111 : vector<8x32xf32>
    %cst_33 = arith.constant dense<0.000000e+00> : vector<8xf32>
    %117 = vector.multi_reduction <add>, %116, %cst_33 [1] : vector<8x32xf32> to vector<8xf32>
    %118 = vector.shape_cast %117 : vector<8xf32> to vector<8x1xf32>
    %cst_34 = arith.constant 3.125000e-02 : f32
    %119 = vector.broadcast %cst_34 : f32 to vector<8x1xf32>
    %120 = arith.mulf %115, %119 : vector<8x1xf32>
    %cst_35 = arith.constant 3.125000e-02 : f32
    %121 = vector.broadcast %cst_35 : f32 to vector<8x1xf32>
    %122 = arith.mulf %118, %121 : vector<8x1xf32>
    %123 = arith.mulf %120, %120 : vector<8x1xf32>
    %124 = arith.subf %122, %123 : vector<8x1xf32>
    %cst_36 = arith.constant 0.000000e+00 : f32
    %125 = vector.broadcast %cst_36 : f32 to vector<8x1xf32>
    %126 = arith.maximumf %124, %125 : vector<8x1xf32>
    %127 = vector.broadcast %120 : vector<8x1xf32> to vector<8x32xf32>
    %128 = arith.subf %111, %127 : vector<8x32xf32>
    %cst_37 = arith.constant 9.99999974E-6 : f32
    %129 = vector.broadcast %cst_37 : f32 to vector<8x1xf32>
    %130 = arith.addf %126, %129 : vector<8x1xf32>
    %131 = math.rsqrt %130 : vector<8x1xf32>
    %132 = vector.broadcast %131 : vector<8x1xf32> to vector<8x32xf32>
    %133 = arith.mulf %128, %132 : vector<8x32xf32>
    %134 = vector.broadcast %112 : vector<1x32xf32> to vector<8x32xf32>
    %135 = arith.mulf %133, %134 : vector<8x32xf32>
    %136 = vector.broadcast %113 : vector<1x32xf32> to vector<8x32xf32>
    %137 = arith.addf %135, %136 : vector<8x32xf32>
    %c112 = arith.constant 112 : index
    %c0_38 = arith.constant 0 : index
    %138 = vector.load %arg4[%c112, %c0_38] : memref<176x128xf32, #tpu.memory_space<vmem>>, vector<32x128xf32>
    %139 = vector.extract_strided_slice %138 {offsets = [0, 0], sizes = [32, 32], strides = [1, 1]} : vector<32x128xf32> to vector<32x32xf32>
    %cst_39 = arith.constant dense<0.000000e+00> : vector<8x32xf32>
    %140 = tpu.matmul %137, %139, %cst_39 {dimension_numbers = #tpu.dot_dimension_numbers<[1], [0], [0], [1], [0, 0, 1, 1], [], []>} : vector<8x32xf32>, vector<32x32xf32>, vector<8x32xf32> -> vector<8x32xf32>
    %141 = vector.extract_strided_slice %0 {offsets = [10, 0], sizes = [1, 32], strides = [1, 1]} : vector<16x128xf32> to vector<1x32xf32>
    %142 = vector.broadcast %141 : vector<1x32xf32> to vector<8x32xf32>
    %143 = arith.addf %140, %142 : vector<8x32xf32>
    %cst_40 = arith.constant 0.000000e+00 : f32
    %144 = vector.broadcast %cst_40 : f32 to vector<8x32xf32>
    %145 = arith.maximumf %143, %144 : vector<8x32xf32>
    %146 = vector.extract_strided_slice %0 {offsets = [11, 0], sizes = [1, 32], strides = [1, 1]} : vector<16x128xf32> to vector<1x32xf32>
    %147 = vector.extract_strided_slice %0 {offsets = [12, 0], sizes = [1, 32], strides = [1, 1]} : vector<16x128xf32> to vector<1x32xf32>
    %cst_41 = arith.constant dense<0.000000e+00> : vector<8xf32>
    %148 = vector.multi_reduction <add>, %145, %cst_41 [1] : vector<8x32xf32> to vector<8xf32>
    %149 = vector.shape_cast %148 : vector<8xf32> to vector<8x1xf32>
    %150 = arith.mulf %145, %145 : vector<8x32xf32>
    %cst_42 = arith.constant dense<0.000000e+00> : vector<8xf32>
    %151 = vector.multi_reduction <add>, %150, %cst_42 [1] : vector<8x32xf32> to vector<8xf32>
    %152 = vector.shape_cast %151 : vector<8xf32> to vector<8x1xf32>
    %cst_43 = arith.constant 3.125000e-02 : f32
    %153 = vector.broadcast %cst_43 : f32 to vector<8x1xf32>
    %154 = arith.mulf %149, %153 : vector<8x1xf32>
    %cst_44 = arith.constant 3.125000e-02 : f32
    %155 = vector.broadcast %cst_44 : f32 to vector<8x1xf32>
    %156 = arith.mulf %152, %155 : vector<8x1xf32>
    %157 = arith.mulf %154, %154 : vector<8x1xf32>
    %158 = arith.subf %156, %157 : vector<8x1xf32>
    %cst_45 = arith.constant 0.000000e+00 : f32
    %159 = vector.broadcast %cst_45 : f32 to vector<8x1xf32>
    %160 = arith.maximumf %158, %159 : vector<8x1xf32>
    %161 = vector.broadcast %154 : vector<8x1xf32> to vector<8x32xf32>
    %162 = arith.subf %145, %161 : vector<8x32xf32>
    %cst_46 = arith.constant 9.99999974E-6 : f32
    %163 = vector.broadcast %cst_46 : f32 to vector<8x1xf32>
    %164 = arith.addf %160, %163 : vector<8x1xf32>
    %165 = math.rsqrt %164 : vector<8x1xf32>
    %166 = vector.broadcast %165 : vector<8x1xf32> to vector<8x32xf32>
    %167 = arith.mulf %162, %166 : vector<8x32xf32>
    %168 = vector.broadcast %146 : vector<1x32xf32> to vector<8x32xf32>
    %169 = arith.mulf %167, %168 : vector<8x32xf32>
    %170 = vector.broadcast %147 : vector<1x32xf32> to vector<8x32xf32>
    %171 = arith.addf %169, %170 : vector<8x32xf32>
    %c144 = arith.constant 144 : index
    %c0_47 = arith.constant 0 : index
    %172 = vector.load %arg4[%c144, %c0_47] : memref<176x128xf32, #tpu.memory_space<vmem>>, vector<32x128xf32>
    %173 = vector.extract_strided_slice %172 {offsets = [0, 0], sizes = [32, 6], strides = [1, 1]} : vector<32x128xf32> to vector<32x6xf32>
    %cst_48 = arith.constant dense<0.000000e+00> : vector<8x6xf32>
    %174 = tpu.matmul %171, %173, %cst_48 {dimension_numbers = #tpu.dot_dimension_numbers<[1], [0], [0], [1], [0, 0, 1, 1], [], []>} : vector<8x32xf32>, vector<32x6xf32>, vector<8x6xf32> -> vector<8x6xf32>
    %175 = vector.extract_strided_slice %0 {offsets = [13, 0], sizes = [1, 6], strides = [1, 1]} : vector<16x128xf32> to vector<1x6xf32>
    %176 = vector.broadcast %175 : vector<1x6xf32> to vector<8x6xf32>
    %177 = arith.addf %174, %176 : vector<8x6xf32>
    %cst_49 = arith.constant dense<0xFF800000> : vector<8xf32>
    %178 = vector.multi_reduction <maximumf>, %177, %cst_49 [1] : vector<8x6xf32> to vector<8xf32>
    %179 = vector.shape_cast %178 : vector<8xf32> to vector<8x1xf32>
    %180 = vector.broadcast %179 : vector<8x1xf32> to vector<8x6xf32>
    %181 = arith.subf %177, %180 : vector<8x6xf32>
    %182 = math.exp %181 : vector<8x6xf32>
    %cst_50 = arith.constant dense<0.000000e+00> : vector<8xf32>
    %183 = vector.multi_reduction <add>, %182, %cst_50 [1] : vector<8x6xf32> to vector<8xf32>
    %184 = vector.shape_cast %183 : vector<8xf32> to vector<8x1xf32>
    %185 = math.log %184 : vector<8x1xf32>
    %cst_51 = arith.constant 0.000000e+00 : f32
    %186 = vector.broadcast %cst_51 : f32 to vector<8x1xf32>
    %187 = arith.subf %186, %185 : vector<8x1xf32>
    %188 = tpu.iota {dimensions = array<i32: 1>} : vector<8x6xi32>
    %189 = vector.broadcast %179 : vector<8x1xf32> to vector<8x6xf32>
    %190 = arith.cmpf oeq, %177, %189 : vector<8x6xf32>
    %c6_i32 = arith.constant 6 : i32
    %191 = vector.broadcast %c6_i32 : i32 to vector<8x6xi32>
    %192 = arith.select %190, %188, %191 : vector<8x6xi1>, vector<8x6xi32>
    %cst_52 = arith.constant dense<2147483647> : vector<8xi32>
    %193 = vector.multi_reduction <minsi>, %192, %cst_52 [1] : vector<8x6xi32> to vector<8xi32>
    %194 = vector.shape_cast %193 : vector<8xi32> to vector<8x1xi32>
    %cst_53 = arith.constant 0.000000e+00 : f32
    %195 = vector.broadcast %cst_53 : f32 to vector<8x128xf32>
    %c0_54 = arith.constant 0 : index
    %c0_55 = arith.constant 0 : index
    %196 = vector.load %arg6[%c0_54, %c0_55] : memref<8x128xf32, #tpu.memory_space<vmem>>, vector<8x128xf32>
    tpu.vector_store %arg6[%c0_54, %c0_55], %195 {strides = array<i32>} : memref<8x128xf32, #tpu.memory_space<vmem>>, vector<8x128xf32>,
    %c0_56 = arith.constant 0 : index
    %c0_57 = arith.constant 0 : index
    %197 = vector.load %arg6[%c0_56, %c0_57] : memref<8x128xf32, #tpu.memory_space<vmem>>, vector<8x32xf32>
    tpu.vector_store %arg6[%c0_56, %c0_57], %111 {strides = array<i32>} : memref<8x128xf32, #tpu.memory_space<vmem>>, vector<8x32xf32>,
    %198 = arith.sitofp %194 : vector<8x1xi32> to vector<8x1xf32>
    %c0_58 = arith.constant 0 : index
    %c32 = arith.constant 32 : index
    %199 = vector.load %arg6[%c0_58, %c32] : memref<8x128xf32, #tpu.memory_space<vmem>>, vector<8x1xf32>
    tpu.vector_store %arg6[%c0_58, %c32], %198 {strides = array<i32>} : memref<8x128xf32, #tpu.memory_space<vmem>>, vector<8x1xf32>,
    %c0_59 = arith.constant 0 : index
    %c33 = arith.constant 33 : index
    %200 = vector.load %arg6[%c0_59, %c33] : memref<8x128xf32, #tpu.memory_space<vmem>>, vector<8x1xf32>
    tpu.vector_store %arg6[%c0_59, %c33], %187 {strides = array<i32>} : memref<8x128xf32, #tpu.memory_space<vmem>>, vector<8x1xf32>,
    return
  }
  func.func @transform_0(%arg0: i32) -> (i32, i32) {
    %c0_i32 = arith.constant 0 : i32
    %c0_i32_0 = arith.constant 0 : i32
    return %arg0, %c0_i32 : i32, i32
  }
  func.func @transform_1(%arg0: i32) -> (i32, i32) {
    %c0_i32 = arith.constant 0 : i32
    %c0_i32_0 = arith.constant 0 : i32
    return %arg0, %c0_i32 : i32, i32
  }
  func.func @transform_2(%arg0: i32) -> (i32, i32) {
    %c0_i32 = arith.constant 0 : i32
    %c0_i32_0 = arith.constant 0 : i32
    return %arg0, %c0_i32 : i32, i32
  }
  func.func @transform_3(%arg0: i32) -> (i32, i32) {
    %c0_i32 = arith.constant 0 : i32
    %c0_i32_0 = arith.constant 0 : i32
    %c0_i32_1 = arith.constant 0 : i32
    return %c0_i32, %c0_i32_0 : i32, i32
  }
  func.func @transform_4(%arg0: i32) -> (i32, i32) {
    %c0_i32 = arith.constant 0 : i32
    %c0_i32_0 = arith.constant 0 : i32
    %c0_i32_1 = arith.constant 0 : i32
    return %c0_i32, %c0_i32_0 : i32, i32
  }
  func.func @transform_5(%arg0: i32) -> (i32, i32) {
    %c0_i32 = arith.constant 0 : i32
    %c0_i32_0 = arith.constant 0 : i32
    return %arg0, %c0_i32 : i32, i32
  }
}

</mosaic_0001>

<bundles_post_ra>
// kernel: tpu_custom_call.1
= control target key start
LH: loop header
LB: loop body
LE: loop exit
PB: predicated region body
PF: predicated region fallthrough
CT: control target
= control target key end

     0   :  { %10 = vsyncpa [#allocation3], 0  ;;  %s1188_s0 = inlined_call_operand.vmem [shape: f32[8,16], index: 0, kind: input, shape index: {}]   ;;  %s1189_s1 = inlined_call_operand.hbm [shape: f32[8,32], index: 1, kind: input, shape index: {}]   ;;  %s1190_s2 = inlined_call_operand.vmem [shape: f32[8,1], index: 2, kind: input, shape index: {}]   ;;  %s1191_s3 = inlined_call_operand.hbm [shape: f32[176,128], index: 3, kind: input, shape index: {}]   ;;  %s1192_s4 = inlined_call_operand.vmem [shape: f32[16,128], index: 4, kind: input, shape index: {}]   ;;  %s1193_s5 = inlined_call_operand.hbm [shape: f32[8,128], index: 5, kind: output, shape index: {}]  }
   0x1   :  { %11 = vsyncpa [#allocation6], 0 }
   0x2   :  { %12 = vsyncpa [#allocation4], 0  ;;  %s986_s18 = smov [#allocation2]   ;;  %s987_s20 = smov [#allocation5]  }
   0x3   :  { %s21_s19 = sshll.u32 %s986_s18, 4  ;;  %s32_s21 = sshll.u32 %s987_s20, 4  ;;  %s22_s19 = int_to_ptr.vmem [resolvable:$true] %s21_s19  ;;  %s1028_s21 = int_to_ptr.vmem [resolvable:$true] %s32_s21 }
   0x4   :  { %s914_s24 = scalar_lea.hbm %s1189_s1, 128 }
   0x5   :  { %p915_p0 = scmp.ne.s32.totalorder %s1189_s1, %s914_s24  ;;  %p918_p1 = scmp.lt.u32.totalorder %s914_s24, %s1189_s1 }
   0x7   :  { %p920_p2 = pnand %p918_p1, %p915_p0 }
   0x9   :  { %923 = shalt.err (!%p920_p2)
}
   0xa   :  { %s924_s29 = scalar_lea.vmem %s22_s19, 128  ;;  %p929_p4 = scmp.lt.s32.totalorder %s22_s19, %s22_s19 }
   0xb   :  { %p925_p3 = scmp.ne.s32.totalorder %s22_s19, %s924_s29  ;;  %p930_p5 = scmp.lt.s32.totalorder %s924_s29, %s924_s29 }
   0xd   :  { %p931_p6 = por %p930_p5, %p929_p4 }
   0xf   :  { %p932_p7 = pnand %p931_p6, %p925_p3 }
  0x11   :  { %935 = shalt.err (!%p932_p7)
}
  0x12   :  { %24 = dma.hbm_to_vmem [thread:$0]  %s1189_s1, 128, %s22_s19, [#allocation3]  }
  0x13   :  { %s936_s9 = scalar_lea.hbm %s1191_s3, 2816 }
  0x14   :  { %p937_p8 = scmp.ne.s32.totalorder %s1191_s3, %s936_s9  ;;  %p940_p9 = scmp.lt.u32.totalorder %s936_s9, %s1191_s3 }
  0x16   :  { %p942_p10 = pnand %p940_p9, %p937_p8 }
  0x18   :  { %945 = shalt.err (!%p942_p10)
}
  0x19   :  { %s946_s14 = scalar_lea.vmem %s1028_s21, 2816  ;;  %p951_p12 = scmp.lt.s32.totalorder %s1028_s21, %s1028_s21 }
  0x1a   :  { %p947_p11 = scmp.ne.s32.totalorder %s1028_s21, %s946_s14  ;;  %p952_p13 = scmp.lt.s32.totalorder %s946_s14, %s946_s14 }
  0x1c   :  { %p953_p0 = por %p952_p13, %p951_p12 }
  0x1e   :  { %p954_p1 = pnand %p953_p0, %p947_p11 }
  0x20   :  { %957 = shalt.err (!%p954_p1)
}
  0x21   :  { %s988_s1 = smov 128   ;;  %s989_s15 = smov 8  }
  0x22   :  { %38 = dma.hbm_to_vmem [thread:$0]  %s1191_s3, 2816, %s1028_s21, [#allocation6], %s988_s1, %s988_s1, %s989_s15  }
  0x23   :  { %980 = dma.done.wait [#allocation3], 128  }
  0x24   :  { %981 = vsyncadd [#allocation3], 4294967168 }
  0x25   :  { %982 = dma.done.wait [#allocation6], 2816  }
  0x26   :  { %983 = vsyncadd [#allocation6], 4294964480  ;;  %v990_v0 = vmov 0.0|0.0   ;;  %vm991_vm0 = vmmov 0   ;;  %v992_v1 = vmov 0.0   ;;  %v50_v2 = vld [vmem:[#allocation5] sm:$0xff]  ;;  %v52_v6 = vlaneseq }
  0x27   :  { %850 = vmatprep.subr.bf16.mxu0 %v990_v0  ;;  %792 = vmatprep.mubr.msk.f32.mxu0 %vm991_vm0, %v992_v1  ;;  %730 = vst [vmem:[#allocation7] sm:$0xff] %v992_v1  ;;  %v51_v3 = vld [vmem:[#allocation5 + $0x8] sm:$0xff]  ;;  %v49_v5 = vld [vmem:[%s1188_s0] sm:$0xff]  ;;  %vm56_vm1 = vcmask 130048   ;;  %vm131_vm2 = vcmask 261120   ;;  %v158_v18 = vld [vmem:[#allocation5 + $0x10] sm:$0xff] }
  0x28   :  { %853 = vmatprep.subr.bf16.mxu1 %v990_v0  ;;  %803 = vmatprep.mubr.msk.f32.mxu1 %vm991_vm0, %v992_v1  ;;  %v851_v4 = vpack.c.bf16 %v51_v3, %v50_v2  ;;  %v1073_v7 = vshrl.u32 %v52_v6, 7  ;;  %v1079_v9 = vld [vmem:[%s1192_s4] sm:$0xff]  ;;  %v160_v20 = vld [vmem:[#allocation5 + $0x20] sm:$0xff]  ;;  %v161_v22 = vld [vmem:[#allocation5 + $0x28] sm:$0xff]  ;;  %v993_v25 = vmov 0   ;;  %s995_s22 = smov 96  }
  0x29   :  { %v159_v19 = vld [vmem:[#allocation5 + $0x18] sm:$0xff]  ;;  %v857_v23 = vpack.c.bf16 %v161_v22, %v160_v20  ;;  %895 = vset.pattern.permute.xlu0 %v993_v25  ;;  %v355_v43 = vld [vmem:[#allocation5 + $0x50] sm:$0xff]  ;;  %v357_v45 = vld [vmem:[#allocation5 + $0x60] sm:$0xff]  ;;  %s996_s23 = smov 32   ;;  %vm698_vm3 = vcmask 48128   ;;  %vm733_vm6 = vcmask 269568  }
  0x2a   :  { %852 = vmatpush3.bf16.msra.mxu0 %v851_v4  ;;  %v54_v8 = vsub.s32 0, %v1073_v7  ;;  %v854_v21 = vpack.c.bf16 %v159_v19, %v158_v18  ;;  %v267_v24 = vld [vmem:[%s1190_s2] sm:$0xff]  ;;  %v150_v34 = vsub.s32 1, %v1073_v7  ;;  %v155_v35 = vsub.s32 2, %v1073_v7  ;;  %v358_v47 = vld [vmem:[#allocation5 + $0x68] sm:$0xff]  ;;  %v274_v61 = vld [vmem:[#allocation5 + $0x30] sm:$0xff] }
  0x2b   :  { %859 = vmatprep.subr.bf16.mxu0 %v990_v0  ;;  %v356_v44 = vld [vmem:[#allocation5 + $0x58] sm:$0xff]  ;;  %v869_v48 = vpack.c.bf16 %v358_v47, %v357_v45  ;;  %v164_v52 = vsub.s32 3, %v1073_v7  ;;  %v276_v2 = vld [vmem:[#allocation5 + $0x40] sm:$0xff]  ;;  %v277_v3 = vld [vmem:[#allocation5 + $0x48] sm:$0xff]  ;;  %s994_s2 = smov 64   ;;  %v258_v22 = vsub.s32 4, %v1073_v7 }
  0x2c   :  { %v55_v10 = vrot.slane %v1079_v9, %v54_v8  ;;  %855 = vmatpush3.bf16.msra.mxu1 %v854_v21  ;;  %v151_v37 = vrot.slane %v1079_v9, %v150_v34  ;;  %v156_v40 = vrot.slane %v1079_v9, %v155_v35  ;;  %v866_v46 = vpack.c.bf16 %v356_v44, %v355_v43  ;;  %v266_v49 = vld [vmem:[#allocation2] sm:$0xff] }
  0x2d   :  { %793 = vmatmul.mubr.msk.f32.vlgmr.msra.gmra.mrb[0].mxu0 %vm56_vm1, %v49_v5  ;;  %856 = vmatprep.subr.bf16.mxu1 %v990_v0  ;;  %v165_v53 = vrot.slane %v1079_v9, %v164_v52  ;;  %v275_v62 = vld [vmem:[#allocation5 + $0x38] sm:$0xff]  ;;  %v863_v4 = vpack.c.bf16 %v277_v3, %v276_v2  ;;  %v361_v5 = vsub.s32 7, %v1073_v7  ;;  %v259_v25 = vrot.slane %v1079_v9, %v258_v22  ;;  %v510_v3 = vld [vmem:[#allocation5 + $0x88] sm:$0xff] }
  0x2e   :  { %814 = vmatprep.mubr.msk.f32.mxu0 %vm991_vm0, %v992_v1  ;;  %v860_v63 = vpack.c.bf16 %v275_v62, %v274_v61  ;;  %v507_v61 = vld [vmem:[#allocation5 + $0x70] sm:$0xff]  ;;  %v508_v62 = vld [vmem:[#allocation5 + $0x78] sm:$0xff]  ;;  %vm735_vm7 = vcmask 277768  }
  0x2f   :  { %v872_v2 = vpack.c.bf16 %v508_v62, %v507_v61 }
  0x30   :  { %858 = vmatpush3.bf16.msra.mxu1 %v857_v23  ;;  %861 = vmatpush3.bf16.msra.mxu0 %v860_v63  ;;  %v263_v23 = vsub.s32 5, %v1073_v7  ;;  %v509_v63 = vld [vmem:[#allocation5 + $0x80] sm:$0xff] }
  0x31   :  { %865 = vmatprep.subr.bf16.mxu1 %v990_v0  ;;  %862 = vmatprep.subr.bf16.mxu0 %v990_v0 }
  0x34   :  { %864 = vmatpush3.bf16.msra.mxu0 %v863_v4  ;;  %v875_v4 = vpack.c.bf16 %v510_v3, %v509_v63 }
  0x35   :  { %871 = vmatprep.subr.bf16.mxu0 %v990_v0 }
 0x100   :  { %v126_v11 = vpop.f32.mrb[0].mxu0 }
 0x101   :  { %v127_v12 = vadd.f32 %v126_v11, %v55_v10  ;;  %v794_v13 = vpop.f32.mrb[1].mxu0  ;;  %v362_v10 = vrot.slane %v1079_v9, %v361_v5 }
 0x103   :  { %v130_v14 = vmax.f32 %v127_v12, 0.0 }
 0x105   :  { %v132_v15 = vsel %vm131_vm2, %v130_v14, 0.0  ;;  %v135_v16 = vmul.f32 %v130_v14, %v130_v14 }
 0x106   :  { %133 = vadd.xlane.f32.xlu0 %v132_v15 }
 0x107   :  { %v136_v17 = vsel %vm131_vm2, %v135_v16, 0.0 }
 0x10a   :  { %137 = vadd.xlane.f32.xlu0 %v136_v17 }
 0x120   :  { %270 = vperm.xlu0 %895, %v267_v24  }
 0x193   :  { %v134_v26 = vpop.xlane.xlu0 %133 }
 0x194   :  { %v139_v27 = vmul.f32 0.03125, %v134_v26 }
 0x196   :  { %v141_v29 = vmul.f32 %v139_v27, %v139_v27  ;;  %v144_v36 = vsub.f32 %v130_v14, %v139_v27 }
 0x197   :  { %v138_v28 = vpop.xlane.xlu0 %137 }
 0x198   :  { %v140_v30 = vmul.f32 0.03125, %v138_v28  ;;  %v264_v28 = vrot.slane %v1079_v9, %v263_v23 }
 0x19a   :  { %v142_v31 = vsub.f32 %v140_v30, %v141_v29 }
 0x19c   :  { %v143_v32 = vmax.f32 %v142_v31, 0.0  ;;  %v280_v31 = vsub.s32 6, %v1073_v7 }
 0x19e   :  { %v145_v33 = vadd.f32 1e-05, %v143_v32  ;;  %v281_v32 = vrot.slane %v1079_v9, %v280_v31 }
 0x19f   :  { %v271_v50 = vpop.permute.xlu0 %270 }
 0x1a0   :  { %896 = vrsqrt.f32 %v145_v33  ;;  %v1103_v51 = vmul.f32 %v271_v50, %v266_v49 }
 0x1aa   :  { %v897_v38 = vpop.eup %896 }
 0x1ab   :  { %v147_v39 = vmul.f32 %v897_v38, %v144_v36 }
 0x1ad   :  { %v152_v41 = vmul.f32 %v151_v37, %v147_v39 }
 0x1af   :  { %v157_v42 = vadd.f32 %v156_v40, %v152_v41 }
 0x1b1   :  { %804 = vmatmul.mubr.msk.f32.vlgmr.msra.gmra.mrb[0].mxu1 %vm131_vm2, %v157_v42 }
 0x1b2   :  { %825 = vmatprep.mubr.msk.f32.mxu1 %vm991_vm0, %v992_v1  ;;  %867 = vmatpush3.bf16.msra.mxu1 %v866_v46 }
 0x1b3   :  { %868 = vmatprep.subr.bf16.mxu1 %v990_v0 }
 0x1b6   :  { %870 = vmatpush3.bf16.msra.mxu1 %v869_v48 }
 0x1b7   :  { %877 = vmatprep.subr.bf16.mxu1 %v990_v0 }
 0x1b9   :  { %826 = vmatmul.mubr.msk.f32.vlgmr.msra.gmra.mrb[2].mxu1 %vm131_vm2, %v1103_v51 }
 0x1ba   :  { %847 = vmatprep.mubr.msk.f32.mxu1 %vm991_vm0, %v992_v1 }
 0x284   :  { %v235_v54 = vpop.f32.mrb[0].mxu1 }
 0x285   :  { %v236_v55 = vadd.f32 %v235_v54, %v165_v53  ;;  %v805_v56 = vpop.f32.mrb[1].mxu1 }
 0x287   :  { %v239_v57 = vmax.f32 %v236_v55, 0.0 }
 0x289   :  { %v240_v58 = vsel %vm131_vm2, %v239_v57, 0.0  ;;  %v243_v59 = vmul.f32 %v239_v57, %v239_v57 }
 0x28a   :  { %241 = vadd.xlane.f32.xlu1 %v240_v58  ;;  %v1145_v58 = vld [vmem:[%s1192_s4 + $0x8] sm:$0xff]  ;;  %s997_s4 = smov [#allocation7]  }
 0x28b   :  { %v244_v60 = vsel %vm131_vm2, %v243_v59, 0.0  ;;  %v492_v59 = vrot.slane %v1145_v58, %v54_v8  ;;  %s743_s26 = sshll.u32 %s997_s4, 4  ;;  %s744_s26 = int_to_ptr.vmem [resolvable:$true] %s743_s26 }
 0x28c   :  { %v432_v11 = vpop.f32.mrb[2].mxu1  ;;  %s958_s27 = scalar_lea.vmem %s744_s26, 128  ;;  %p963_p3 = scmp.lt.s32.totalorder %s744_s26, %s744_s26 }
 0x28d   :  { %v433_v12 = vadd.f32 %v432_v11, %v362_v10  ;;  %v827_v13 = vpop.f32.mrb[3].mxu1  ;;  %p959_p2 = scmp.ne.s32.totalorder %s744_s26, %s958_s27  ;;  %p964_p4 = scmp.lt.s32.totalorder %s958_s27, %s958_s27 }
 0x28e   :  { %245 = vadd.xlane.f32.xlu1 %v244_v60  ;;  %v501_v60 = vrot.slane %v1145_v58, %v150_v34 }
 0x28f   :  { %p965_p5 = por %p964_p4, %p963_p3 }
 0x291   :  { %p966_p6 = pnand %p965_p5, %p959_p2 }
 0x29f   :  { %444 = vrot.lane.b32.xlu1 %v433_v12, %s994_s2 }
 0x317   :  { %v242_v14 = vpop.xlane.xlu1 %241 }
 0x318   :  { %v247_v15 = vmul.f32 0.03125, %v242_v14 }
 0x31a   :  { %v249_v17 = vmul.f32 %v247_v15, %v247_v15  ;;  %v252_v24 = vsub.f32 %v239_v57, %v247_v15 }
 0x31b   :  { %v246_v16 = vpop.xlane.xlu1 %245 }
 0x31c   :  { %v248_v18 = vmul.f32 0.03125, %v246_v16 }
 0x31e   :  { %v250_v19 = vsub.f32 %v248_v18, %v249_v17 }
 0x31f   :  { %v445_v42 = vpop.permute.xlu1 %444 }
 0x320   :  { %v251_v20 = vmax.f32 %v250_v19, 0.0 }
 0x322   :  { %v253_v21 = vadd.f32 1e-05, %v251_v20 }
 0x324   :  { %898 = vrsqrt.f32 %v253_v21 }
 0x32e   :  { %v899_v26 = vpop.eup %898 }
 0x32f   :  { %v255_v27 = vmul.f32 %v899_v26, %v252_v24 }
 0x331   :  { %v260_v29 = vmul.f32 %v259_v25, %v255_v27  ;;  %v514_v25 = vrot.slane %v1145_v58, %v155_v35 }
 0x333   :  { %v265_v30 = vadd.f32 %v264_v28, %v260_v29 }
 0x335   :  { %815 = vmatmul.mubr.msk.f32.vlgmr.msra.gmra.mrb[2].mxu0 %vm131_vm2, %v265_v30 }
 0x336   :  { %836 = vmatprep.mubr.msk.f32.mxu0 %vm991_vm0, %v992_v1  ;;  %873 = vmatpush3.bf16.msra.mxu0 %v872_v2 }
 0x337   :  { %874 = vmatprep.subr.bf16.mxu0 %v990_v0 }
 0x33a   :  { %876 = vmatpush3.bf16.msra.mxu0 %v875_v4 }
 0x408   :  { %v351_v33 = vpop.f32.mrb[2].mxu0 }
 0x409   :  { %v352_v36 = vadd.f32 %v351_v33, %v281_v32  ;;  %v816_v37 = vpop.f32.mrb[3].mxu0  ;;  %v617_v33 = vld [vmem:[#allocation5 + $0x90] sm:$0xff] }
 0x40b   :  { %v436_v38 = vadd.f32 %v433_v12, %v352_v36 }
 0x40d   :  { %v757_v39 = vmul.f32 -1.442695, %v436_v38  ;;  %v619_v38 = vld [vmem:[#allocation5 + $0xa0] sm:$0xff] }
 0x40f   :  { %900 = vpow2.f32 %v757_v39  ;;  %v620_v39 = vld [vmem:[#allocation5 + $0xa8] sm:$0xff] }
 0x410   :  { %v881_v35 = vpack.c.bf16 %v620_v39, %v619_v38 }
 0x419   :  { %v901_v40 = vpop.eup %900 }
 0x41a   :  { %v440_v41 = vadd.f32 1.0, %v901_v40 }
 0x41c   :  { %902 = vrcp.f32 %v440_v41 }
 0x426   :  { %v903_v43 = vpop.eup %902 }
 0x427   :  { %v447_v44 = vmul.f32 %v903_v43, %v445_v42  ;;  %v454_v47 = vsub.f32 1.0, %v903_v43 }
 0x429   :  { %449 = vrot.lane.b32.xlu1 %v447_v44, %s994_s2 }
 0x49b   :  { %v450_v45 = vpop.permute.xlu1 %449 }
 0x49c   :  { %v452_v1 = vadd.f32 %v450_v45, %v352_v36  ;;  %v618_v36 = vld [vmem:[#allocation5 + $0x98] sm:$0xff] }
 0x49d   :  { %v878_v37 = vpack.c.bf16 %v618_v36, %v617_v33 }
 0x49e   :  { %904 = vtanh.f32 %v452_v1 }
 0x49f   :  { %879 = vmatpush3.bf16.msra.mxu1 %v878_v37 }
 0x4a0   :  { %880 = vmatprep.subr.bf16.mxu1 %v990_v0 }
 0x4a3   :  { %882 = vmatpush3.bf16.msra.mxu1 %v881_v35 }
 0x4a8   :  { %v905_v46 = vpop.eup %904 }
 0x4a9   :  { %456 = vrot.lane.b32.xlu1 %v905_v46, %s995_s22 }
 0x4ad   :  { %460 = vrot.lane.b32.xlu1 %v1103_v51, %s996_s23 }
 0x51b   :  { %v457_v9 = vpop.permute.xlu1 %456 }
 0x51c   :  { %v459_v49 = vmul.f32 %v457_v9, %v454_v47  ;;  %v610_v9 = vrot.slane %v1145_v58, %v164_v52 }
 0x51f   :  { %v461_v48 = vpop.permute.xlu1 %460 }
 0x520   :  { %v463_v50 = vmul.f32 %v903_v43, %v461_v48 }
 0x522   :  { %v464_v53 = vadd.f32 %v463_v50, %v459_v49  ;;  %v615_v49 = vrot.slane %v1145_v58, %v258_v22 }
 0x524   :  { %466 = vrot.lane.b32.xlu1 %v464_v53, %s995_s22  ;;  %v472_v54 = vmul.f32 %v464_v53, %v464_v53 }
 0x528   :  { %474 = vrot.lane.b32.xlu1 %v472_v54, %s995_s22  ;;  %v624_v54 = vrot.slane %v1145_v58, %v263_v23 }
 0x596   :  { %v467_v55 = vpop.permute.xlu1 %466 }
 0x597   :  { %731 = vst.msk [vmem:[#allocation7] sm:$0xff] %vm131_vm2, %v467_v55  ;;  %v469_v56 = vsel %vm131_vm2, %v467_v55, 0.0 }
 0x598   :  { %470 = vadd.xlane.f32.xlu1 %v469_v56 }
 0x59a   :  { %v475_v57 = vpop.permute.xlu1 %474 }
 0x59b   :  { %v477_v51 = vsel %vm131_vm2, %v475_v57, 0.0 }
 0x59c   :  { %478 = vadd.xlane.f32.xlu0 %v477_v51  ;;  %v712_v51 = vand.u32 127, %v52_v6 }
 0x5a9   :  { %494 = vrot.lane.b32.xlu1 %v492_v59, %s996_s23 }
 0x5b2   :  { %503 = vrot.lane.b32.xlu0 %v501_v60, %s996_s23 }
 0x625   :  { %v471_v5 = vpop.xlane.xlu1 %470 }
 0x626   :  { %v480_v10 = vmul.f32 0.03125, %v471_v5 }
 0x628   :  { %v482_v8 = vmul.f32 %v480_v10, %v480_v10  ;;  %v485_v34 = vsub.f32 %v464_v53, %v480_v10 }
 0x629   :  { %v479_v11 = vpop.xlane.xlu0 %478  ;;  %v495_v17 = vpop.permute.xlu1 %494 }
 0x62a   :  { %v481_v12 = vmul.f32 0.03125, %v479_v11 }
 0x62c   :  { %v483_v13 = vsub.f32 %v481_v12, %v482_v8 }
 0x62d   :  { %v504_v19 = vpop.permute.xlu0 %503 }
 0x62e   :  { %v484_v14 = vmax.f32 %v483_v13, 0.0 }
 0x630   :  { %v486_v15 = vadd.f32 1e-05, %v484_v14 }
 0x632   :  { %906 = vrsqrt.f32 %v486_v15 }
 0x63c   :  { %v907_v16 = vpop.eup %906 }
 0x63d   :  { %v488_v18 = vmul.f32 %v907_v16, %v485_v34 }
 0x63f   :  { %v497_v20 = vmul.f32 %v495_v17, %v488_v18 }
 0x641   :  { %v506_v21 = vadd.f32 %v504_v19, %v497_v20 }
 0x643   :  { %516 = vrot.lane.b32.xlu1 %v506_v21, %s995_s22 }
 0x6b5   :  { %v517_v24 = vpop.permute.xlu1 %516 }
 0x6b6   :  { %837 = vmatmul.mubr.msk.f32.vlgmr.msra.gmra.mrb[4].mxu0 %vm131_vm2, %v517_v24 }
 0x789   :  { %v586_v26 = vpop.f32.mrb[4].mxu0 }
 0x78a   :  { %v587_v27 = vadd.f32 %v586_v26, %v514_v25  ;;  %v838_v28 = vpop.f32.mrb[5].mxu0 }
 0x78c   :  { %v590_v29 = vmax.f32 %v587_v27, 0.0 }
 0x78e   :  { %v591_v30 = vsel %vm131_vm2, %v590_v29, 0.0  ;;  %v594_v31 = vmul.f32 %v590_v29, %v590_v29 }
 0x78f   :  { %592 = vadd.xlane.f32.xlu1 %v591_v30 }
 0x790   :  { %v595_v32 = vsel %vm131_vm2, %v594_v31, 0.0 }
 0x791   :  { %596 = vadd.xlane.f32.xlu0 %v595_v32 }
 0x81c   :  { %v593_v40 = vpop.xlane.xlu1 %592 }
 0x81d   :  { %v598_v41 = vmul.f32 0.03125, %v593_v40 }
 0x81e   :  { %v597_v42 = vpop.xlane.xlu0 %596 }
 0x81f   :  { %v600_v43 = vmul.f32 %v598_v41, %v598_v41  ;;  %v599_v44 = vmul.f32 0.03125, %v597_v42  ;;  %v603_v47 = vsub.f32 %v590_v29, %v598_v41 }
 0x821   :  { %v601_v45 = vsub.f32 %v599_v44, %v600_v43 }
 0x823   :  { %v602_v1 = vmax.f32 %v601_v45, 0.0 }
 0x825   :  { %v604_v46 = vadd.f32 1e-05, %v602_v1 }
 0x827   :  { %908 = vrsqrt.f32 %v604_v46 }
 0x831   :  { %v909_v48 = vpop.eup %908 }
 0x832   :  { %v606_v0 = vmul.f32 %v909_v48, %v603_v47 }
 0x834   :  { %v611_v50 = vmul.f32 %v610_v9, %v606_v0 }
 0x836   :  { %v616_v53 = vadd.f32 %v615_v49, %v611_v50 }
 0x838   :  { %848 = vmatmul.mubr.msk.f32.vlgmr.msra.gmra.mrb[4].mxu1 %vm131_vm2, %v616_v53 }
 0x90b   :  { %v694_v55 = vpop.f32.mrb[4].mxu1 }
 0x90c   :  { %v695_v56 = vadd.f32 %v694_v55, %v624_v54  ;;  %v849_v57 = vpop.f32.mrb[5].mxu1 }
 0x90e   :  { %v699_v52 = vsel %vm698_vm3, %v695_v56, -inf }
 0x90f   :  { %700 = vmax.xlane.f32.xlu0 %v699_v52 }
 0x99c   :  { %v701_v59 = vpop.xlane.xlu0 %700 }
 0x99d   :  { %v702_v60 = vsub.f32 %v695_v56, %v701_v59  ;;  %vm713_vm4 = vcmp.eq.f32.partialorder %v695_v56, %v701_v59 }
 0x99e   :  { %v714_v22 = vsel %vm713_vm4, %v712_v51, 6 }
 0x99f   :  { %v703_v61 = vmul.f32 1.442695, %v702_v60  ;;  %v715_v62 = vsel %vm698_vm3, %v714_v22, 2147483647 }
 0x9a0   :  { %v717_v63 = vshra.s32 %v715_v62, 16  ;;  %v716_v2 = vand.u32 65535, %v715_v62 }
 0x9a1   :  { %910 = vpow2.f32 %v703_v61 }
 0x9a2   :  { %v719_v7 = vcvt.s32.f32 %v717_v63  ;;  %v718_v4 = vcvt.s32.f32 %v716_v2 }
 0x9a4   :  { %720 = vmin.xlane.f32.xlu1 %v719_v7 }
 0x9ab   :  { %v911_v23 = vpop.eup %910 }
 0x9ac   :  { %v705_v58 = vsel %vm698_vm3, %v911_v23, 0.0 }
 0x9ad   :  { %706 = vadd.xlane.f32.xlu0 %v705_v58 }
 0xa31   :  { %v721_v3 = vpop.xlane.xlu1 %720 }
 0xa32   :  { %vm722_vm5 = vcmp.eq.f32.partialorder %v719_v7, %v721_v3  ;;  %v727_v10 = vcvt.f32.s32 %v721_v3 }
 0xa33   :  { %v723_v6 = vsel %vm722_vm5, %v718_v4, inf }
 0xa34   :  { %724 = vmin.xlane.f32.xlu1 %v723_v6  ;;  %v728_v12 = vshll.u32 %v727_v10, 16 }
 0xa3a   :  { %v707_v5 = vpop.xlane.xlu0 %706 }
 0xa3b   :  { %912 = vlog2.f32 %v707_v5 }
 0xa45   :  { %v913_v11 = vpop.eup %912 }
 0xa46   :  { %v709_v14 = vmul.f32 0.6931472, %v913_v11 }
 0xa48   :  { %v710_v16 = vsub.f32 0.0, %v709_v14 }
 0xac1   :  { %v725_v8 = vpop.xlane.xlu1 %724 }
 0xac2   :  { %v726_v13 = vcvt.f32.s32 %v725_v8 }
 0xac4   :  { %v729_v15 = vadd.s32 %v728_v12, %v726_v13 }
 0xac6   :  { %v732_v34 = vcvt.s32.f32 %v729_v15 }
 0xac8   :  { %734 = vst.msk [vmem:[#allocation7] sm:$0xff] %vm733_vm6, %v732_v34 }
 0xac9   :  { %736 = vst.msk [vmem:[#allocation7] sm:$0xff] %vm735_vm7, %v710_v16 }
 0xaca   :  { %969 = shalt.err (!%p966_p6)
}
 0xacb   :  { %s970_s30 = scalar_lea.hbm %s1193_s5, 128 }
 0xacc   :  { %p971_p7 = scmp.ne.s32.totalorder %s1193_s5, %s970_s30  ;;  %p974_p8 = scmp.lt.u32.totalorder %s970_s30, %s1193_s5 }
 0xace   :  { %p976_p9 = pnand %p974_p8, %p971_p7 }
 0xad0   :  { %979 = shalt.err (!%p976_p9)
}
 0xad1   :  { %746 = dma.vmem_to_hbm [thread:$0]  %s744_s26, 128, %s1193_s5, [#allocation4]  }
 0xad2   :  { %984 = dma.done.wait [#allocation4], 128  }
 0xad3   :  { %985 = vsyncadd [#allocation4], 4294967168 }
 0xad4   :  { %750 = vsyncpa [#allocation3], 1 }
 0xad5   :  { %751 = vsyncpa [#allocation6], 1 }
 0xad6   :  { %752 = vsyncpa [#allocation4], 1 }

</bundles_post_ra>
